<compile_context>
chip_gen: v5e
topology: v5e:2x2
jax: 0.10.0
libtpu: 0.0.40
codegen_flags: <defaults>
</compile_context>

<pallas_src>
import functools

import numpy as np
import jax
import jax.numpy as jnp
from jax import lax
from jax.experimental import pallas as pl
from jax.experimental.pallas import tpu as pltpu


def _round_up(x, m):
    return ((x + m - 1) // m) * m


@functools.lru_cache(maxsize=None)
def _query_vmem_bytes():
    """Physical VMEM per core; conservative 64 MiB fallback (v7x-sized)."""
    try:
        v = int(pltpu.get_tpu_info().vmem_capacity_bytes)
        if v > 0:
            return v
    except Exception:
        pass
    return 64 * 1024 * 1024


@functools.lru_cache(maxsize=None)
def _query_num_tensorcores():
    """2 TensorCores per chip only on v7x; v5e/v6e are single-TC."""
    try:
        kind = jax.devices()[0].device_kind.lower()
    except Exception:
        return 1
    return 2 if ("v7" in kind or "7x" in kind) else 1


def _proto_kernel(feat_ref, lab_ref, sum_ref, cnt_ref, *, tn, kpad, hw,
                  n_per_split, mask_feat):
    # feat_ref: (C, TN) f32 ; lab_ref: (1, TN) i32
    # sum_ref : (C, Kpad) f32 ; cnt_ref: (Kpad, 1) f32  (resident accumulators)
    s = pl.program_id(0)
    b = pl.program_id(1)
    n = pl.program_id(2)

    @pl.when((b == 0) & (n == 0))
    def _():
        sum_ref[...] = jnp.zeros_like(sum_ref)
        cnt_ref[...] = jnp.zeros_like(cnt_ref)

    # Unclamped global pixel offset of this tile.  Tail-of-partial-tile and
    # clamp-duplicated tiles are masked via `valid`.
    start = (s * n_per_split + n) * tn
    pix = lax.broadcasted_iota(jnp.int32, (1, tn), 1)
    valid = pix < (hw - start)                                    # (1, TN) bool

    feat = feat_ref[...]
    if mask_feat:
        # Only generated when a partial tile exists: zero invalid lanes so
        # stale VMEM (possibly NaN/Inf) cannot poison sums via 0 * NaN.
        feat = jnp.where(valid, feat, 0.0)

    class_ids = lax.broadcasted_iota(jnp.int32, (kpad, tn), 0)    # (Kpad, TN)
    onehot = ((lab_ref[...] == class_ids) & valid).astype(jnp.float32)

    dn = (((1,), (1,)), ((), ()))                                 # contract TN
    sum_ref[...] += lax.dot_general(feat, onehot, dn,
                                    preferred_element_type=jnp.float32)
    # Counts via cross-lane (XLU) reduce -> overlaps the MXU; no M=1 matmul.
    cnt_ref[...] += jnp.sum(onehot, axis=1, keepdims=True)


def _kernel_config(C, HW, num_classes):
    kpad = max(8, _round_up(num_classes, 8))
    vmem_phys = _query_vmem_bytes()
    num_tc = _query_num_tensorcores()

    # Pixel tile: biggest TN such that double-buffered feature + label tiles,
    # the Kpad x TN one-hot (plus a possible transposed staging copy) and
    # accumulator slack fit in ~half of physical VMEM.
    budget = vmem_phys // 2
    bytes_per_lane = (3 * C + 2 * kpad + 2) * 4
    tn = budget // bytes_per_lane // 128 * 128
    tn = max(128, min(tn, 32768))
    tn = min(tn, _round_up(HW, 128))

    n_tiles = -(-HW // tn)
    nsplit = 2 if (num_tc >= 2 and n_tiles >= 2) else 1
    n_per_split = -(-n_tiles // nsplit)

    vmem_limit = max(32 * 1024 * 1024, int(0.75 * vmem_phys))
    return kpad, tn, nsplit, n_per_split, vmem_limit


@functools.partial(
    jax.jit,
    static_argnames=("num_classes", "kpad", "tn", "nsplit", "n_per_split",
                     "vmem_limit"))
def _class_means_impl(feat, labels, *, num_classes, kpad, tn, nsplit,
                      n_per_split, vmem_limit):
    B, C, HW = feat.shape
    n_tiles = -(-HW // tn)

    def tile_idx(s, n):
        # Clamp so the DMA'd block is always a valid block index; excess
        # iterations (only possible with nsplit=2) are fully masked in-kernel.
        return jnp.minimum(s * n_per_split + n, n_tiles - 1)

    kernel = functools.partial(_proto_kernel, tn=tn, kpad=kpad, hw=HW,
                               n_per_split=n_per_split,
                               mask_feat=(HW % tn != 0))

    sums, cnts = pl.pallas_call(
        kernel,
        out_shape=(jax.ShapeDtypeStruct((nsplit, C, kpad), jnp.float32),
                   jax.ShapeDtypeStruct((nsplit, kpad, 1), jnp.float32)),
        grid_spec=pltpu.PrefetchScalarGridSpec(
            num_scalar_prefetch=0,
            grid=(nsplit, B, n_per_split),
            in_specs=[
                pl.BlockSpec((None, C, tn), lambda s, b, n: (b, 0, tile_idx(s, n))),
                pl.BlockSpec((None, 1, tn), lambda s, b, n: (b, 0, tile_idx(s, n))),
            ],
            out_specs=[
                pl.BlockSpec((None, C, kpad), lambda s, b, n: (s, 0, 0)),
                pl.BlockSpec((None, kpad, 1), lambda s, b, n: (s, 0, 0)),
            ],
        ),
        compiler_params=pltpu.CompilerParams(
            dimension_semantics=("parallel", "arbitrary", "arbitrary"),
            vmem_limit_bytes=vmem_limit),
    )(feat, labels)

    # Tiny epilogue: reduce per-core partials, slice Kpad -> K, divide.
    sums = jnp.sum(sums, axis=0)[:, :num_classes]        # (C, K)
    counts = jnp.sum(cnts, axis=0)[:num_classes, 0]      # (K,)
    means = sums / jnp.maximum(counts, 1.0)[None, :]
    return means, counts


def class_means(feat, labels, num_classes):
    """feat (B, C, HW) f32, labels (B, 1, HW) i32 -> (means (C, K), counts (K,))."""
    B, C, HW = feat.shape
    kpad, tn, nsplit, n_per_split, vmem_limit = _kernel_config(C, HW, num_classes)
    return _class_means_impl(feat, labels, num_classes=num_classes, kpad=kpad,
                             tn=tn, nsplit=nsplit, n_per_split=n_per_split,
                             vmem_limit=vmem_limit)


def nearest_resize(labels, out_hw):
    """Matches F.interpolate(labels[:, None].float(), size, mode='nearest')."""
    B, Hi, Wi = labels.shape
    Ho, Wo = out_hw
    ri = (jnp.arange(Ho) * Hi) // Ho
    ci = (jnp.arange(Wo) * Wi) // Wo
    return labels[:, ri[:, None], ci[None, :]]


class ProtosPallas:
    """JAX/Pallas port of Protos (exp=False path)."""

    def __init__(self, num_classes, channels, momentum=0.85):
        self.num_classes = num_classes
        self.channels = channels
        self.momentum = momentum
        self.protos = {c: jnp.zeros((channels, 0), jnp.float32)
                       for c in range(num_classes)}
        self.num_samples = {c: 0.0 for c in range(num_classes)}
        self.batches_seen = 0

    def samples_init(self):
        self.num_samples = {c: 0.0 for c in range(self.num_classes)}

    def forward(self, features, labels):
        B, C, H, W = features.shape
        labels_r = nearest_resize(labels, (H, W)).astype(jnp.int32)

        feat_flat = features.reshape(B, C, H * W)      # free reshape, no copy
        labels_flat = labels_r.reshape(B, 1, H * W)

        # Kick off the (unavoidable) device->host copies for the ragged
        # per-class gather early, so they overlap the Pallas reduction.
        try:
            features.copy_to_host_async()
            labels_r.copy_to_host_async()
        except Exception:
            pass

        means, counts = class_means(feat_flat, labels_flat,
                                    num_classes=self.num_classes)
        means = np.asarray(jax.device_get(means))
        counts = np.asarray(jax.device_get(counts))

        protos = {c: jnp.asarray(means[:, c:c + 1])
                  for c in range(self.num_classes) if counts[c] > 0}

        # TODO(synk): ragged per-class feature gather (data-dependent shapes)
        # has no static-shape Pallas equivalent; done host-side like PyTorch.
        feat_np = np.asarray(jax.device_get(features))    # (B, C, H, W)
        lab_np = np.asarray(jax.device_get(labels_r))     # (B, H, W)
        feat_vecs = {}
        for c in range(self.num_classes):
            chunks = [feat_np[b][:, lab_np[b] == c] for b in range(B)]
            feat_vecs[c] = jnp.asarray(np.concatenate(chunks, axis=1))

        self.num_samples = {c: self.num_samples[c] + float(counts[c])
                            for c in range(self.num_classes)}
        for c in protos:
            if self.protos[c].shape[1] == 0:
                self.protos[c] = protos[c]
            elif self.num_samples[c] != 0:
                self.protos[c] = (self.momentum * self.protos[c]
                                  + (1.0 - self.momentum) * protos[c])
        self.batches_seen += 1
        return protos, feat_vecs


if __name__ == "__main__":
    key = jax.random.PRNGKey(0)
    kf, kl = jax.random.split(key)

    B, C, H, W = 2, 4, 16, 16
    num_classes = 3
    features = jax.random.normal(kf, (B, C, H, W), dtype=jnp.float32)
    labels = jax.random.randint(kl, (B, 8, 8), 0, num_classes)  # low-res labels

    mod = ProtosPallas(num_classes=num_classes, channels=C, momentum=0.85)
    protos, feat_vecs = mod.forward(features, labels)
    for c in protos:
        jax.block_until_ready(protos[c])

    # reference check (pure numpy) against the PyTorch semantics
    lab_r = np.asarray(jax.device_get(nearest_resize(labels, (H, W))))
    feat_np = np.asarray(jax.device_get(features))
    ok = True
    for c in range(num_classes):
        vecs = []
        for b in range(B):
            mask = lab_r[b] == c
            vecs.append(feat_np[b][:, mask])
        vecs = np.concatenate(vecs, axis=1)
        if vecs.size == 0:
            ok = ok and (c not in protos)
        else:
            ref = vecs.mean(axis=-1, keepdims=True)
            got = np.asarray(jax.device_get(protos[c]))
            ok = ok and np.allclose(ref, got, rtol=1e-5, atol=1e-5)
            ok = ok and np.allclose(vecs,
                                    np.asarray(jax.device_get(feat_vecs[c])))
    if ok:
        print("KERNEL_OK")
    else:
        print("MISMATCH")
</pallas_src>

<mosaic_0001>
module attributes {stable_mosaic.version = 11 : i64} {
  func.func @_proto_kernel(%arg0: i32, %arg1: i32, %arg2: i32, %arg3: memref<1x4x256xf32, #tpu.memory_space<vmem>>, %arg4: memref<1x1x256xi32, #tpu.memory_space<vmem>>, %arg5: memref<1x4x8xf32, #tpu.memory_space<vmem>>, %arg6: memref<1x8x1xf32, #tpu.memory_space<vmem>>) attributes {dimension_semantics = [#tpu.dimension_semantics<parallel>, #tpu.dimension_semantics<arbitrary>, #tpu.dimension_semantics<arbitrary>], iteration_bounds = array<i64: 1, 2, 1>, scalar_prefetch = 0 : i64, scratch_operands = 0 : i64, tpu.core_type = #tpu.core_type<tc>, window_params = [{transform_indices = @transform_0, window_bounds = array<i64: 1, 4, 256>}, {transform_indices = @transform_1, window_bounds = array<i64: 1, 1, 256>}, {transform_indices = @transform_2, window_bounds = array<i64: 1, 4, 8>}, {transform_indices = @transform_3, window_bounds = array<i64: 1, 8, 1>}]} {
    %c0_i32 = arith.constant 0 : i32
    %0 = arith.cmpi eq, %arg1, %c0_i32 : i32
    %c0_i32_0 = arith.constant 0 : i32
    %1 = arith.cmpi eq, %arg2, %c0_i32_0 : i32
    %2 = arith.andi %0, %1 : i1
    %3 = arith.extui %2 : i1 to i32
    %c0_i32_1 = arith.constant 0 : i32
    %4 = arith.cmpi ne, %3, %c0_i32_1 : i32
    scf.if %4 {
      %cst_21 = arith.constant 0.000000e+00 : f32
      %38 = vector.broadcast %cst_21 : f32 to vector<4x8xf32>
      %c0_22 = arith.constant 0 : index
      %c0_23 = arith.constant 0 : index
      %c0_24 = arith.constant 0 : index
      %39 = vector.load %arg5[%c0_22, %c0_23, %c0_24] : memref<1x4x8xf32, #tpu.memory_space<vmem>>, vector<1x4x8xf32>
      %40 = vector.shape_cast %39 : vector<1x4x8xf32> to vector<4x8xf32>
      %41 = vector.shape_cast %38 : vector<4x8xf32> to vector<1x4x8xf32>
      tpu.vector_store %arg5[%c0_22, %c0_23, %c0_24], %41 {strides = array<i32>} : memref<1x4x8xf32, #tpu.memory_space<vmem>>, vector<1x4x8xf32>,
      %cst_25 = arith.constant 0.000000e+00 : f32
      %42 = vector.broadcast %cst_25 : f32 to vector<8x1xf32>
      %c0_26 = arith.constant 0 : index
      %c0_27 = arith.constant 0 : index
      %c0_28 = arith.constant 0 : index
      %43 = vector.load %arg6[%c0_26, %c0_27, %c0_28] : memref<1x8x1xf32, #tpu.memory_space<vmem>>, vector<1x8x1xf32>
      %44 = vector.shape_cast %43 : vector<1x8x1xf32> to vector<8x1xf32>
      %45 = vector.shape_cast %42 : vector<8x1xf32> to vector<1x8x1xf32>
      tpu.vector_store %arg6[%c0_26, %c0_27, %c0_28], %45 {strides = array<i32>} : memref<1x8x1xf32, #tpu.memory_space<vmem>>, vector<1x8x1xf32>,
    } else {
    }
    %c1_i32 = arith.constant 1 : i32
    %5 = arith.muli %arg0, %c1_i32 : i32
    %6 = arith.addi %5, %arg2 : i32
    %c256_i32 = arith.constant 256 : i32
    %7 = arith.muli %6, %c256_i32 : i32
    %8 = tpu.iota {dimensions = array<i32: 1>} : vector<1x256xi32>
    %c256_i32_2 = arith.constant 256 : i32
    %9 = arith.subi %c256_i32_2, %7 : i32
    %10 = vector.broadcast %9 : i32 to vector<1x256xi32>
    %11 = arith.cmpi slt, %8, %10 : vector<1x256xi32>
    %c0 = arith.constant 0 : index
    %c0_3 = arith.constant 0 : index
    %c0_4 = arith.constant 0 : index
    %12 = vector.load %arg3[%c0, %c0_3, %c0_4] : memref<1x4x256xf32, #tpu.memory_space<vmem>>, vector<1x4x256xf32>
    %13 = vector.shape_cast %12 : vector<1x4x256xf32> to vector<4x256xf32>
    %14 = tpu.iota {dimensions = array<i32: 0>} : vector<8x256xi32>
    %c0_5 = arith.constant 0 : index
    %c0_6 = arith.constant 0 : index
    %c0_7 = arith.constant 0 : index
    %15 = vector.load %arg4[%c0_5, %c0_6, %c0_7] : memref<1x1x256xi32, #tpu.memory_space<vmem>>, vector<1x1x256xi32>
    %16 = vector.shape_cast %15 : vector<1x1x256xi32> to vector<1x256xi32>
    %17 = vector.broadcast %16 : vector<1x256xi32> to vector<8x256xi32>
    %18 = arith.cmpi eq, %17, %14 : vector<8x256xi32>
    %19 = vector.broadcast %11 : vector<1x256xi1> to vector<8x256xi1>
    %20 = arith.andi %18, %19 : vector<8x256xi1>
    %21 = arith.extui %20 : vector<8x256xi1> to vector<8x256xi32>
    %22 = arith.sitofp %21 : vector<8x256xi32> to vector<8x256xf32>
    %c0_8 = arith.constant 0 : index
    %c0_9 = arith.constant 0 : index
    %c0_10 = arith.constant 0 : index
    %23 = vector.load %arg5[%c0_8, %c0_9, %c0_10] : memref<1x4x8xf32, #tpu.memory_space<vmem>>, vector<1x4x8xf32>
    %24 = vector.shape_cast %23 : vector<1x4x8xf32> to vector<4x8xf32>
    %cst = arith.constant dense<0.000000e+00> : vector<4x8xf32>
    %25 = tpu.matmul %13, %22, %cst {dimension_numbers = #tpu.dot_dimension_numbers<[1], [1], [0], [0], [0, 0, 1, 0], [], []>} : vector<4x256xf32>, vector<8x256xf32>, vector<4x8xf32> -> vector<4x8xf32>
    %26 = arith.addf %24, %25 : vector<4x8xf32>
    %c0_11 = arith.constant 0 : index
    %c0_12 = arith.constant 0 : index
    %c0_13 = arith.constant 0 : index
    %27 = vector.load %arg5[%c0_11, %c0_12, %c0_13] : memref<1x4x8xf32, #tpu.memory_space<vmem>>, vector<1x4x8xf32>
    %28 = vector.shape_cast %27 : vector<1x4x8xf32> to vector<4x8xf32>
    %29 = vector.shape_cast %26 : vector<4x8xf32> to vector<1x4x8xf32>
    tpu.vector_store %arg5[%c0_11, %c0_12, %c0_13], %29 {strides = array<i32>} : memref<1x4x8xf32, #tpu.memory_space<vmem>>, vector<1x4x8xf32>,
    %c0_14 = arith.constant 0 : index
    %c0_15 = arith.constant 0 : index
    %c0_16 = arith.constant 0 : index
    %30 = vector.load %arg6[%c0_14, %c0_15, %c0_16] : memref<1x8x1xf32, #tpu.memory_space<vmem>>, vector<1x8x1xf32>
    %31 = vector.shape_cast %30 : vector<1x8x1xf32> to vector<8x1xf32>
    %cst_17 = arith.constant dense<0.000000e+00> : vector<8xf32>
    %32 = vector.multi_reduction <add>, %22, %cst_17 [1] : vector<8x256xf32> to vector<8xf32>
    %33 = vector.shape_cast %32 : vector<8xf32> to vector<8x1xf32>
    %34 = arith.addf %31, %33 : vector<8x1xf32>
    %c0_18 = arith.constant 0 : index
    %c0_19 = arith.constant 0 : index
    %c0_20 = arith.constant 0 : index
    %35 = vector.load %arg6[%c0_18, %c0_19, %c0_20] : memref<1x8x1xf32, #tpu.memory_space<vmem>>, vector<1x8x1xf32>
    %36 = vector.shape_cast %35 : vector<1x8x1xf32> to vector<8x1xf32>
    %37 = vector.shape_cast %34 : vector<8x1xf32> to vector<1x8x1xf32>
    tpu.vector_store %arg6[%c0_18, %c0_19, %c0_20], %37 {strides = array<i32>} : memref<1x8x1xf32, #tpu.memory_space<vmem>>, vector<1x8x1xf32>,
    return
  }
  func.func @transform_0(%arg0: i32, %arg1: i32, %arg2: i32) -> (i32, i32, i32) {
    %c1_i32 = arith.constant 1 : i32
    %0 = arith.muli %arg0, %c1_i32 : i32
    %1 = arith.addi %0, %arg2 : i32
    %c0_i32 = arith.constant 0 : i32
    %2 = arith.minsi %1, %c0_i32 : i32
    %c0_i32_0 = arith.constant 0 : i32
    %c0_i32_1 = arith.constant 0 : i32
    return %arg1, %c0_i32_0, %2 : i32, i32, i32
  }
  func.func @transform_1(%arg0: i32, %arg1: i32, %arg2: i32) -> (i32, i32, i32) {
    %c1_i32 = arith.constant 1 : i32
    %0 = arith.muli %arg0, %c1_i32 : i32
    %1 = arith.addi %0, %arg2 : i32
    %c0_i32 = arith.constant 0 : i32
    %2 = arith.minsi %1, %c0_i32 : i32
    %c0_i32_0 = arith.constant 0 : i32
    %c0_i32_1 = arith.constant 0 : i32
    return %arg1, %c0_i32_0, %2 : i32, i32, i32
  }
  func.func @transform_2(%arg0: i32, %arg1: i32, %arg2: i32) -> (i32, i32, i32) {
    %c0_i32 = arith.constant 0 : i32
    %c0_i32_0 = arith.constant 0 : i32
    %c0_i32_1 = arith.constant 0 : i32
    return %arg0, %c0_i32, %c0_i32_0 : i32, i32, i32
  }
  func.func @transform_3(%arg0: i32, %arg1: i32, %arg2: i32) -> (i32, i32, i32) {
    %c0_i32 = arith.constant 0 : i32
    %c0_i32_0 = arith.constant 0 : i32
    %c0_i32_1 = arith.constant 0 : i32
    return %arg0, %c0_i32, %c0_i32_0 : i32, i32, i32
  }
}

</mosaic_0001>

<bundles_post_ra>
// kernel: _class_means_impl.1
= control target key start
LH: loop header
LB: loop body
LE: loop exit
PB: predicated region body
PF: predicated region fallthrough
CT: control target
= control target key end

     0   :  { %9 = vsyncpa [#allocation3], 0  ;;  %s857_s0 = inlined_call_operand.hbm [shape: f32[2,4,256], index: 0, kind: input, shape index: {}]   ;;  %s858_s1 = inlined_call_operand.hbm [shape: s32[2,1,256], index: 1, kind: input, shape index: {}]   ;;  %s859_s2 = inlined_call_operand.vmem [shape: f32[1,4,8], index: 2, kind: output, shape index: {0}]   ;;  %s860_s3 = inlined_call_operand.vmem [shape: f32[1,8,1], index: 3, kind: output, shape index: {1}]  }
   0x1   :  { %11 = vsyncpa [#allocation3 + $0x1], 0 }
   0x2   :  { %12 = vsyncpa [#allocation5], 0 }
   0x3   :  { %14 = vsyncpa [#allocation5 + $0x1], 0  ;;  %s739_s12 = smov 0   ;;  %s741_s13 = smov 0  }
   0x4   :  { %s743_s14 = smov 0   ;;  %s745_s15 = smov 0  }
   0x5   :  { %s747_s16 = smov 0   ;;  %s749_s17 = smov 0  }
   0x6 LB: > { %s515_s18 = sadd.s32 4294967295, %s714_s17   ;;  %s35_s19 = sadd.s32 1, %s710_s16  ;;  %s714_s17 = sphi %s749_s17, %s20_s17   ;;  %s710_s16 = sphi %s747_s16, %s868_s16   ;;  %s706_s15 = sphi %s745_s15, %s867_s15   ;;  %s702_s14 = sphi %s743_s14, %s866_s14   ;;  %s698_s13 = sphi %s741_s13, %s865_s13   ;;  %s694_s12 = sphi %s739_s12, %s864_s12  }
   0x7   : > { %p37_p0 = scmp.ge.s32.totalorder %s35_s19, 2  ;;  %s54_s20 = sadd.s32 1, %s702_s14 }
   0x8   : > { %p61_p1 = scmp.ne.s32.totalorder %s702_s14, %s698_s13  ;;  %p62_p2 = scmp.eq.s32.totalorder %s714_s17, 0 }
   0x9   : > { %s870_s19 = smov (%p37_p0, %s35_s19), 0  ;;  %p67_p4 = scmp.ne.s32.totalorder %s698_s13, %s694_s12 }
   0xa   : > { %p775_p3 = por %p62_p2, %p61_p1  ;;  %s49_s22 = ssub.s32 %s710_s16, %s870_s19 }
   0xb   : > { %p68_p5 = scmp.eq.s32.totalorder %s515_s18, 0  ;;  %p52_p6 = scmp.eq.s32.totalorder %s49_s22, 0 }
   0xc   : > { %p548_p8 = scmp.lt.s32.totalorder %s714_s17, 2  ;;  %s177_s25 = sand.u32 1, %s702_s14  }
   0xd   : > { %p782_p7 = por %p68_p5, %p67_p4  ;;  %s535_s26 = sshll.u32 %s710_s16, 3 }
   0xe   : > { %s788_s24 = scalar_select %p52_p6, %s702_s14, %s54_s20  }
   0xf   : > { %s518_s27 = sshll.u32 %s177_s25, 3  ;;  %s191_s30 = scalar_lea.hbm %s857_s0, %s535_s26 }
  0x10   : > { %s193_s4 = sshll.u32 %s191_s30, 4  ;;  %s181_s5 = scalar_lea.vmem [#allocation2], %s518_s27  ;;  %s194_s4 = int_to_ptr.hbm [resolvable:$true] %s193_s4 }
  0x11   : > { %s195_s6 = sshll.u32 %s181_s5, 4  ;;  %p797_p9 = pnand %p548_p8, %p775_p3  ;;  %s196_s6 = int_to_ptr.vmem [resolvable:$true] %s195_s6 }
  0x12   : > { %p523_p10 = scmp.ge.s32.totalorder %s714_s17, 1  ;;  %p224_p11 = scmp.lt.s32.totalorder %s714_s17, 3 }
  0x13   : > { %s521_s8 = sshll.u32 %s177_s25, 1  ;;  %s178_s9 = scalar_lea.sflag [#allocation3], %s177_s25 }
  0x14   : > { %544 = dma.hbm_to_vmem [thread:$0]  (!%p797_p9), %s194_s4, 128, %s196_s6, %s178_s9  }
  0x15   : > { %p225_p12 = pnand %p523_p10, %p224_p11  ;;  %s522_s10 = sshll.u32 %s710_s16, 1 }
  0x16   : > { %s206_s11 = scalar_lea.vmem [#allocation4], %s521_s8  ;;  %s215_s21 = scalar_lea.hbm %s858_s1, %s522_s10 }
  0x17   : > { %s219_s12 = sshll.u32 %s206_s11, 4  ;;  %s217_s22 = sshll.u32 %s215_s21, 4  ;;  %s220_s12 = int_to_ptr.vmem [resolvable:$true] %s219_s12  ;;  %s218_s22 = int_to_ptr.hbm [resolvable:$true] %s217_s22 }
  0x18   : > { %s203_s26 = scalar_lea.sflag [#allocation5], %s177_s25  ;;  %228 = sbr.rel (%p225_p12) target bundleno = 180 (0xb4), region = 28 }
  0x19   : > { %547 = dma.hbm_to_vmem [thread:$0]  (!%p797_p9), %s218_s22, 32, %s220_s12, %s203_s26  }
  0x1a   : > { %s230_s27 = sand.u32 (!%p225_p12), 1, %s698_s13  }
  0x1b   : > { %s524_s28 = sshll.u32 (!%p225_p12), %s230_s27, 3  ;;  %s231_s29 = scalar_lea.sflag (!%p225_p12), [#allocation3], %s230_s27 }
  0x1c   : > { %s234_s30 = scalar_lea.vmem (!%p225_p12), [#allocation2], %s524_s28 }
  0x1d   : > { %685 = dma.done.wait (%p782_p7), %s231_s29, 128  }
  0x1e   : > { %687 = vsyncadd (%p782_p7), %s231_s29, 4294967168  ;;  %s525_s4 = sshll.u32 %s230_s27, 1  ;;  %s241_s5 = scalar_lea.sflag [#allocation5], %s230_s27 }
  0x1f   : > { %s244_s6 = scalar_lea.vmem [#allocation4], %s525_s4 }
  0x20   : > { %689 = dma.done.wait (%p782_p7), %s241_s5, 32  }
  0x21   : > { %691 = vsyncadd (%p782_p7), %s241_s5, 4294967264  ;;  %p292_p13 = scmp.eq.s32.totalorder %s706_s15, 0 }
  0x22   : > { %vm298_vm0 = vcmask (%p292_p13), 60416   ;;  %vm300_vm1 = vcmask (%p292_p13), 7168   ;;  %v716_v0 = vmov (%p292_p13), 0.0  }
  0x23   : > { %297 = sbr.rel (!%p292_p13) target bundleno = 40 (0x28), region = 40  ;;  %299 = vst.msk [vmem:[%s859_s2] sm:$0xf] (%p292_p13), %vm298_vm0, %v716_v0 }
  0x24   : > { %301 = vst.msk [vmem:[%s860_s3] sm:$0xff] (%p292_p13), %vm300_vm1, %v716_v0 }
  0x28 PF: > { %v312_v1 = vlaneseq  ;;  %v314_v2 = vld [vmem:[%s244_s6] sm:$0x3]  ;;  %v311_v3 = vld [vmem:[%s234_s30] sm:$0xff]  ;;  %v717_v7 = vmov 1.0   ;;  %v718_v8 = vmov 0.0   ;;  %vm384_vm4 = vcmask 7168  }
  0x29   : > { %v315_v4 = vperm.slane %v314_v2, 0  ;;  %v316_v5 = vperm.slane %v314_v2, 1  ;;  %331 = vst [vmem:[#allocation1] ss:$2 sm:$0xff] %v311_v3  ;;  %vm377_vm5 = vcmask 60416  }
  0x2a   : > { %v313_v6 = vshrl.u32 %v312_v1, 7  ;;  %v329_v18 = vld [vmem:[%s859_s2] sm:$0xf] }
  0x2b   : > { %v379_v14 = vld [vmem:[%s860_s3] sm:$0xff] }
  0x2c   : > { %vm317_vm2 = vcmp.eq.s32.totalorder %v315_v4, %v313_v6  ;;  %vm318_vm3 = vcmp.eq.s32.totalorder %v316_v5, %v313_v6 }
  0x2d   : > { %529 = vmatpush.xpose.msk.msra.mxu0 %vm317_vm2, %v717_v7  ;;  %530 = vmatpush.xpose.msk.msra.mxu1 %vm318_vm3, %v717_v7  ;;  %v527_v9 = vsel %vm317_vm2, 1.0, %v718_v8  ;;  %v528_v10 = vsel %vm318_vm3, 1.0, %v718_v8 }
  0x2e   : > { %v380_v11 = vadd.f32 %v528_v10, %v527_v9 }
  0x30   : > { %v332_v12 = vld.sshfl [vmem:[#allocation1] sm:$0xff pattern:$0x75316420]  ;;  %v333_v13 = vld.sshfl [vmem:[#allocation1 + $0x8] sm:$0xff pattern:$0x75316420]  ;;  %381 = vadd.xlane.f32.xlu0 %v380_v11 }
  0x31   : > { %352 = vmatmul.f32.vlgmr.msra.gmra.mxu0 %v332_v12  ;;  %372 = vmatmul.f32.vlgmr.msra.gmra.mxu1 %v333_v13 }
  0xa3   : > { %v382_v15 = vpop.xlane.xlu0 %381 }
  0xa4   : > { %v383_v16 = vadd.f32 %v382_v15, %v379_v14 }
  0xa6   : > { %385 = vst.msk [vmem:[%s860_s3] sm:$0xff] %vm384_vm4, %v383_v16 }
  0xae   : > { %v353_v17 = vpop.f32.mrf.mxu0  ;;  %v373_v19 = vpop.f32.mrf.mxu1 }
  0xaf   : > { %v374_v20 = vadd.f32 %v373_v19, %v353_v17 }
  0xb1   : > { %v376_v21 = vadd.f32 %v374_v20, %v329_v18 }
  0xb3   : > { %378 = vst.msk [vmem:[%s859_s2] sm:$0xf] %vm377_vm5, %v376_v21 }
  0xb4 PF: > { %s20_s17 = sadd.s32 1, %s714_s17   ;;  %s864_s12 = smov %s698_s13 }
  0xb5   : > { %p17_p0 = scmp.ge.s32.totalorder %s20_s17, 4   ;;  %s865_s13 = smov %s702_s14 }
  0xb6   : > { %s866_s14 = smov %s788_s24  ;;  %s867_s15 = smov %s710_s16 }
  0xb7   : > { %s868_s16 = smov %s870_s19  ;;  %19 = sbr.rel (!%p17_p0) target bundleno = 6 (0x6), region = 97 }
  0xbc   :  { %419 = vsyncpa [#allocation3], 1 }
  0xbd   :  { %421 = vsyncpa [#allocation3 + $0x1], 1 }
  0xbe   :  { %422 = vsyncpa [#allocation5], 1 }
  0xbf   :  { %424 = vsyncpa [#allocation5 + $0x1], 1 }

</bundles_post_ra>
